<compile_context>
chip_gen: v7x
topology: tpu7x:2x2x1
jax: 0.10.0
libtpu: 0.0.40
codegen_flags: <defaults>
</compile_context>

<pallas_src>
from functools import partial

import jax
import jax.numpy as jnp
from jax.experimental import pallas as pl
from jax.experimental.pallas import tpu as pltpu


# ----------------------------- Pallas kernel -------------------------------

def _conv_down_kernel(x_ref, h_ref, w_ref, b_ref, o_ref, *, th, Wo, C):
    # x_ref: (1, 2*th, Wo, 2C)  input rows [2*th*i, 2*th*(i+1)); the two input
    #                           columns of each output column packed into 2C.
    # h_ref: (1, 1, Wo, 2C)     halo = input row 2*th*i - 1 (masked when i==0).
    # w_ref: (9C, Cout)         conv weight re-ordered to match the fused K dim.
    # b_ref: (1, Cout)          bias (f32).
    # o_ref: (1, th*Wo, Cout)   flattened-spatial output tile.
    i = pl.program_id(1)
    cdt = jnp.bfloat16

    S = x_ref[0].astype(cdt)                               # (2th, Wo, 2C)
    halo = h_ref[0].astype(cdt)                            # (1, Wo, 2C)
    halo = halo * (i > 0).astype(cdt)                      # top zero-pad row

    # Per-output-row planes, each (th, Wo, 2C); kernel row offset kh in {0,1,2}.
    S4 = S.reshape(th, 2, Wo, 2 * C)
    P1 = S4[:, 0]                                          # input rows 2*oh     (kh=1)
    P2 = S4[:, 1]                                          # input rows 2*oh + 1 (kh=2)
    if th > 1:
        P0 = jnp.concatenate([halo, S4[: th - 1, 1]], axis=0)   # rows 2*oh-1 (kh=0)
    else:
        P0 = halo

    def left_tap(P):
        # kw=0 tap: odd input column of the previous output column; zero at ow=0.
        z = jnp.zeros((th, 1, C), cdt)
        if Wo == 1:
            return z
        return jnp.concatenate([z, P[:, : Wo - 1, C:]], axis=1)

    # One fused implicit-GEMM operand, K = 9*C, channel order:
    #   [P1 (kh1,kw1|kw2), P2 (kh2,kw1|kw2), P0 (kh0,kw1|kw2),
    #    left(P1) (kh1,kw0), left(P2) (kh2,kw0), left(P0) (kh0,kw0)]
    A = jnp.concatenate(
        [P1, P2, P0, left_tap(P1), left_tap(P2), left_tap(P0)], axis=-1
    ).reshape(th * Wo, 9 * C)

    acc = jnp.dot(A, w_ref[...], preferred_element_type=jnp.float32)
    o_ref[0] = (acc + b_ref[...]).astype(o_ref.dtype)


# --------------------------- VMEM / tile selection ---------------------------

def _vmem_sizes():
    phys = 64 * 1024 * 1024
    try:
        phys = int(pltpu.get_tpu_info().vmem_capacity_bytes)
    except Exception:
        pass  # fall back to the most conservative (v7x per-core) size
    limit = min((phys * 3) // 4, 96 * 1024 * 1024)   # 48 MiB v7x, 96 MiB v5e/v6e
    budget = (limit * 2) // 3                        # working-set target for tiling
    return budget, limit


def _vmem_need_bytes(th, Wo, C_in, C_out, in_isz, out_isz):
    M = th * Wo
    slab = 2 * th * Wo * 2 * C_in * in_isz
    halo = Wo * 2 * C_in * in_isz
    outb = M * C_out * out_isz
    wgt = 9 * C_in * C_out * 2 + C_out * 4           # grid-invariant: charged once
    pipelined = 2 * (slab + halo + outb)             # double-buffered streams
    tmp = (2 * th * Wo * 2 * C_in * 2                # bf16 slab
           + 3 * M * 9 * C_in * 2                    # tap pieces + fused operand A
           + M * C_out * 4)                          # f32 dot result
    return pipelined + wgt + tmp


def _pick_row_tile(Ho, Wo, C_in, C_out, in_isz, out_isz, B, budget, min_steps=4):
    legal = [t for t in range(1, Ho + 1)
             if Ho % t == 0 and ((t * Wo) % 8 == 0 or t == Ho)]
    fit = [t for t in legal
           if _vmem_need_bytes(t, Wo, C_in, C_out, in_isz, out_isz) <= budget]
    if not fit:
        fit = [min(legal)]

    def score(t):
        m = t * Wo
        steps = B * (Ho // t)
        return (steps >= min_steps,            # pipeline depth / v7x megacore occupancy
                (m % 256 == 0) or (t == Ho),   # MXU-row aligned M
                512 <= m <= 2048,              # sweet spot
                m)                             # otherwise: larger tile

    return max(fit, key=score)


# ------------------------------- wrapper ------------------------------------

def conv_downsample(x, weight_oihw, bias, *, row_tile=None, out_dtype=None):
    """ConvDownsample.forward.  x: NHWC (B,H,W,Cin) -> NHWC (B,H/2,W/2,Cout)."""
    B, H, W, C_in = x.shape
    C_out = weight_oihw.shape[0]
    assert weight_oihw.shape == (C_out, C_in, 3, 3)
    assert H % 2 == 0 and W % 2 == 0, "even spatial dims only"
    # TODO(synk): odd H/W needs an extra right/bottom halo path; ConvMLP feeds even sizes.
    Ho, Wo = H // 2, W // 2
    out_dtype = x.dtype if out_dtype is None else out_dtype

    in_isz = jnp.dtype(x.dtype).itemsize
    out_isz = jnp.dtype(out_dtype).itemsize

    budget, vmem_limit = _vmem_sizes()
    if row_tile is None:
        th = _pick_row_tile(Ho, Wo, C_in, C_out, in_isz, out_isz, B, budget)
    else:
        th = row_tile
    assert Ho % th == 0 and ((th * Wo) % 8 == 0 or th == Ho), (th, Wo, Ho)
    nt = Ho // th

    # Free, layout-preserving repack: even/odd input columns of each output
    # column interleaved into a 2*C_in channel dim.  No pad, no gather, no cast.
    xp = x.reshape(B, H, Wo, 2 * C_in)

    # Weight (O,I,kh,kw) -> re-ordered (9*Cin, Cout) matching the fused K dim.
    w_hwio = weight_oihw.transpose(2, 3, 1, 0)                      # (3,3,Cin,Cout)
    k_order = [(1, 1), (1, 2), (2, 1), (2, 2), (0, 1), (0, 2), (1, 0), (2, 0), (0, 0)]
    w_big = jnp.concatenate([w_hwio[kh, kw] for kh, kw in k_order],
                            axis=0).astype(jnp.bfloat16)            # (9*Cin, Cout)
    b2 = bias.reshape(1, C_out).astype(jnp.float32)

    kernel = partial(_conv_down_kernel, th=th, Wo=Wo, C=C_in)

    flops = 2 * B * Ho * Wo * 9 * C_in * C_out
    bytes_accessed = int(xp.size * in_isz
                         + B * nt * Wo * 2 * C_in * in_isz          # halo re-reads
                         + w_big.size * 2 + b2.size * 4
                         + B * Ho * Wo * C_out * out_isz)

    out = pl.pallas_call(
        kernel,
        out_shape=jax.ShapeDtypeStruct((B, Ho * Wo, C_out), out_dtype),
        grid=(B, nt),
        in_specs=[
            # main row slab: input rows [2*th*i, 2*th*(i+1))
            pl.BlockSpec((1, 2 * th, Wo, 2 * C_in), lambda b, i: (b, i, 0, 0)),
            # top halo row: input row 2*th*i - 1 (clamped; masked in-kernel for i==0)
            pl.BlockSpec((1, 1, Wo, 2 * C_in),
                         lambda b, i: (b, jnp.maximum(2 * th * i - 1, 0), 0, 0)),
            # grid-invariant weight / bias
            pl.BlockSpec((9 * C_in, C_out), lambda b, i: (0, 0)),
            pl.BlockSpec((1, C_out), lambda b, i: (0, 0)),
        ],
        out_specs=pl.BlockSpec((1, th * Wo, C_out), lambda b, i: (b, i, 0)),
        compiler_params=pltpu.CompilerParams(
            dimension_semantics=("parallel", "parallel"),
            vmem_limit_bytes=vmem_limit,
        ),
        cost_estimate=pl.CostEstimate(flops=flops, transcendentals=0,
                                      bytes_accessed=bytes_accessed),
    )(xp, xp, w_big, b2)

    return out.reshape(B, Ho, Wo, C_out)


# --------------------------------- main --------------------------------------

if __name__ == "__main__":
    # First ConvDownsample of ConvMLP-S: embedding 64 -> 128 (Cout fills the
    # 128 lanes; 2*Cin packs the input channel dim lane-dense).  Small spatial.
    B, H, W = 2, 16, 16
    C_in, C_out = 64, 128

    key = jax.random.PRNGKey(0)
    kx, kw, kb = jax.random.split(key, 3)

    x = jax.random.normal(kx, (B, H, W, C_in), dtype=jnp.float32)

    fan_in = C_in * 3 * 3
    bound = 1.0 / (fan_in ** 0.5)
    weight = jax.random.uniform(kw, (C_out, C_in, 3, 3),
                                minval=-bound, maxval=bound, dtype=jnp.float32)
    bias = jax.random.uniform(kb, (C_out,),
                              minval=-bound, maxval=bound, dtype=jnp.float32)

    # Exercise: explicit multi-row-tile (halo across tiles), auto-tile, and
    # bf16-output (halved writeback) paths.
    y_tiled = jax.block_until_ready(
        jax.jit(partial(conv_downsample, row_tile=2))(x, weight, bias))
    y_auto = jax.block_until_ready(
        jax.jit(conv_downsample)(x, weight, bias))
    y_bf16 = jax.block_until_ready(
        jax.jit(partial(conv_downsample, out_dtype=jnp.bfloat16))(x, weight, bias))

    # Reference on the same bf16-rounded operands (the kernel feeds the MXU
    # bf16 with f32 accumulation) — same semantics as the PyTorch NCHW conv
    # sandwiched between the two permutes.
    xq = x.astype(jnp.bfloat16).astype(jnp.float32)
    wq = weight.astype(jnp.bfloat16).astype(jnp.float32)
    ref = jax.lax.conv_general_dilated(
        xq, wq.transpose(2, 3, 1, 0),
        window_strides=(2, 2), padding=((1, 1), (1, 1)),
        dimension_numbers=("NHWC", "HWIO", "NHWC")) + bias[None, None, None, :]

    assert y_tiled.shape == (B, H // 2, W // 2, C_out), y_tiled.shape
    assert jnp.allclose(y_tiled, ref, atol=1e-2, rtol=1e-2), \
        float(jnp.max(jnp.abs(y_tiled - ref)))
    assert jnp.allclose(y_auto, ref, atol=1e-2, rtol=1e-2), \
        float(jnp.max(jnp.abs(y_auto - ref)))
    assert jnp.allclose(y_bf16.astype(jnp.float32), ref, atol=3e-2, rtol=3e-2), \
        float(jnp.max(jnp.abs(y_bf16.astype(jnp.float32) - ref)))

    print("KERNEL_OK")
</pallas_src>

<mosaic_0001>
module attributes {stable_mosaic.version = 11 : i64} {
  func.func @_conv_down_kernel(%arg0: i32, %arg1: i32, %arg2: memref<1x4x8x128xf32, #tpu.memory_space<vmem>>, %arg3: memref<1x1x8x128xf32, #tpu.memory_space<vmem>>, %arg4: memref<576x128xbf16, #tpu.memory_space<vmem>>, %arg5: memref<1x128xf32, #tpu.memory_space<vmem>>, %arg6: memref<1x16x128xf32, #tpu.memory_space<vmem>>) attributes {dimension_semantics = [#tpu.dimension_semantics<parallel>, #tpu.dimension_semantics<parallel>], iteration_bounds = array<i64: 2, 4>, scalar_prefetch = 0 : i64, scratch_operands = 0 : i64, tpu.core_type = #tpu.core_type<tc>, window_params = [{transform_indices = @transform_0, window_bounds = array<i64: 1, 4, 8, 128>}, {transform_indices = @transform_1, window_bounds = array<i64: 1, 1, 8, 128>}, {pipeline_mode = #tpu.pipeline_mode<synchronous>, transform_indices = @transform_2, window_bounds = array<i64: 576, 128>}, {pipeline_mode = #tpu.pipeline_mode<synchronous>, transform_indices = @transform_3, window_bounds = array<i64: 1, 128>}, {transform_indices = @transform_4, window_bounds = array<i64: 1, 16, 128>}]} {
    %c0 = arith.constant 0 : index
    %c0_0 = arith.constant 0 : index
    %c0_1 = arith.constant 0 : index
    %c0_2 = arith.constant 0 : index
    %0 = vector.load %arg2[%c0, %c0_0, %c0_1, %c0_2] : memref<1x4x8x128xf32, #tpu.memory_space<vmem>>, vector<1x4x8x128xf32>
    %1 = vector.shape_cast %0 : vector<1x4x8x128xf32> to vector<4x8x128xf32>
    %2 = arith.truncf %1 : vector<4x8x128xf32> to vector<4x8x128xbf16>
    %c0_3 = arith.constant 0 : index
    %c0_4 = arith.constant 0 : index
    %c0_5 = arith.constant 0 : index
    %c0_6 = arith.constant 0 : index
    %3 = vector.load %arg3[%c0_3, %c0_4, %c0_5, %c0_6] : memref<1x1x8x128xf32, #tpu.memory_space<vmem>>, vector<1x1x8x128xf32>
    %4 = vector.shape_cast %3 : vector<1x1x8x128xf32> to vector<1x8x128xf32>
    %5 = arith.truncf %4 : vector<1x8x128xf32> to vector<1x8x128xbf16>
    %c0_i32 = arith.constant 0 : i32
    %6 = arith.cmpi sgt, %arg1, %c0_i32 : i32
    %7 = arith.extui %6 : i1 to i32
    %8 = arith.sitofp %7 : i32 to f32
    %9 = arith.truncf %8 : f32 to bf16
    %10 = vector.broadcast %9 : bf16 to vector<1x8x128xbf16>
    %11 = arith.mulf %5, %10 : vector<1x8x128xbf16>
    %12 = vector.shape_cast %2 : vector<4x8x128xbf16> to vector<2x2x8x128xbf16>
    %13 = vector.extract_strided_slice %12 {offsets = [0, 0, 0, 0], sizes = [2, 1, 8, 128], strides = [1, 1, 1, 1]} : vector<2x2x8x128xbf16> to vector<2x1x8x128xbf16>
    %14 = vector.shape_cast %13 : vector<2x1x8x128xbf16> to vector<2x8x128xbf16>
    %15 = vector.extract_strided_slice %12 {offsets = [0, 1, 0, 0], sizes = [2, 1, 8, 128], strides = [1, 1, 1, 1]} : vector<2x2x8x128xbf16> to vector<2x1x8x128xbf16>
    %16 = vector.shape_cast %15 : vector<2x1x8x128xbf16> to vector<2x8x128xbf16>
    %17 = vector.extract_strided_slice %12 {offsets = [0, 1, 0, 0], sizes = [1, 1, 8, 128], strides = [1, 1, 1, 1]} : vector<2x2x8x128xbf16> to vector<1x1x8x128xbf16>
    %18 = vector.shape_cast %17 : vector<1x1x8x128xbf16> to vector<1x8x128xbf16>
    %19 = tpu.concatenate %11, %18 in 0 : vector<1x8x128xbf16>, vector<1x8x128xbf16> -> vector<2x8x128xbf16>
    %cst = arith.constant 0.000000e+00 : bf16
    %20 = vector.broadcast %cst : bf16 to vector<2x1x64xbf16>
    %21 = vector.extract_strided_slice %14 {offsets = [0, 0, 64], sizes = [2, 7, 64], strides = [1, 1, 1]} : vector<2x8x128xbf16> to vector<2x7x64xbf16>
    %22 = tpu.concatenate %20, %21 in 1 : vector<2x1x64xbf16>, vector<2x7x64xbf16> -> vector<2x8x64xbf16>
    %cst_7 = arith.constant 0.000000e+00 : bf16
    %23 = vector.broadcast %cst_7 : bf16 to vector<2x1x64xbf16>
    %24 = vector.extract_strided_slice %16 {offsets = [0, 0, 64], sizes = [2, 7, 64], strides = [1, 1, 1]} : vector<2x8x128xbf16> to vector<2x7x64xbf16>
    %25 = tpu.concatenate %23, %24 in 1 : vector<2x1x64xbf16>, vector<2x7x64xbf16> -> vector<2x8x64xbf16>
    %cst_8 = arith.constant 0.000000e+00 : bf16
    %26 = vector.broadcast %cst_8 : bf16 to vector<2x1x64xbf16>
    %27 = vector.extract_strided_slice %19 {offsets = [0, 0, 64], sizes = [2, 7, 64], strides = [1, 1, 1]} : vector<2x8x128xbf16> to vector<2x7x64xbf16>
    %28 = tpu.concatenate %26, %27 in 1 : vector<2x1x64xbf16>, vector<2x7x64xbf16> -> vector<2x8x64xbf16>
    %29 = tpu.concatenate %14, %16, %19, %22, %25, %28 in 2 : vector<2x8x128xbf16>, vector<2x8x128xbf16>, vector<2x8x128xbf16>, vector<2x8x64xbf16>, vector<2x8x64xbf16>, vector<2x8x64xbf16> -> vector<2x8x576xbf16>
    %30 = vector.shape_cast %29 : vector<2x8x576xbf16> to vector<16x576xbf16>
    %c0_9 = arith.constant 0 : index
    %c0_10 = arith.constant 0 : index
    %31 = vector.load %arg4[%c0_9, %c0_10] : memref<576x128xbf16, #tpu.memory_space<vmem>>, vector<576x128xbf16>
    %cst_11 = arith.constant dense<0.000000e+00> : vector<16x128xf32>
    %32 = tpu.matmul %30, %31, %cst_11 {dimension_numbers = #tpu.dot_dimension_numbers<[1], [0], [0], [1], [0, 0, 1, 1], [], []>} : vector<16x576xbf16>, vector<576x128xbf16>, vector<16x128xf32> -> vector<16x128xf32>
    %c0_12 = arith.constant 0 : index
    %c0_13 = arith.constant 0 : index
    %33 = vector.load %arg5[%c0_12, %c0_13] : memref<1x128xf32, #tpu.memory_space<vmem>>, vector<1x128xf32>
    %34 = vector.broadcast %33 : vector<1x128xf32> to vector<16x128xf32>
    %35 = arith.addf %32, %34 : vector<16x128xf32>
    %c0_14 = arith.constant 0 : index
    %c0_15 = arith.constant 0 : index
    %c0_16 = arith.constant 0 : index
    %36 = vector.load %arg6[%c0_14, %c0_15, %c0_16] : memref<1x16x128xf32, #tpu.memory_space<vmem>>, vector<1x16x128xf32>
    %37 = vector.shape_cast %36 : vector<1x16x128xf32> to vector<16x128xf32>
    %38 = vector.shape_cast %35 : vector<16x128xf32> to vector<1x16x128xf32>
    tpu.vector_store %arg6[%c0_14, %c0_15, %c0_16], %38 {strides = array<i32>} : memref<1x16x128xf32, #tpu.memory_space<vmem>>, vector<1x16x128xf32>,
    return
  }
  func.func @transform_0(%arg0: i32, %arg1: i32) -> (i32, i32, i32, i32) {
    %c0_i32 = arith.constant 0 : i32
    %c0_i32_0 = arith.constant 0 : i32
    %c0_i32_1 = arith.constant 0 : i32
    return %arg0, %arg1, %c0_i32, %c0_i32_0 : i32, i32, i32, i32
  }
  func.func @transform_1(%arg0: i32, %arg1: i32) -> (i32, i32, i32, i32) {
    %c4_i32 = arith.constant 4 : i32
    %0 = arith.muli %c4_i32, %arg1 : i32
    %c1_i32 = arith.constant 1 : i32
    %1 = arith.subi %0, %c1_i32 : i32
    %c0_i32 = arith.constant 0 : i32
    %2 = arith.maxsi %1, %c0_i32 : i32
    %c0_i32_0 = arith.constant 0 : i32
    %c0_i32_1 = arith.constant 0 : i32
    %c0_i32_2 = arith.constant 0 : i32
    return %arg0, %2, %c0_i32_0, %c0_i32_1 : i32, i32, i32, i32
  }
  func.func @transform_2(%arg0: i32, %arg1: i32) -> (i32, i32) {
    %c0_i32 = arith.constant 0 : i32
    %c0_i32_0 = arith.constant 0 : i32
    %c0_i32_1 = arith.constant 0 : i32
    return %c0_i32, %c0_i32_0 : i32, i32
  }
  func.func @transform_3(%arg0: i32, %arg1: i32) -> (i32, i32) {
    %c0_i32 = arith.constant 0 : i32
    %c0_i32_0 = arith.constant 0 : i32
    %c0_i32_1 = arith.constant 0 : i32
    return %c0_i32, %c0_i32_0 : i32, i32
  }
  func.func @transform_4(%arg0: i32, %arg1: i32) -> (i32, i32, i32) {
    %c0_i32 = arith.constant 0 : i32
    %c0_i32_0 = arith.constant 0 : i32
    return %arg0, %arg1, %c0_i32 : i32, i32, i32
  }
}

</mosaic_0001>

<bundles_post_ra>
// kernel: conv_downsample.1
= control target key start
LH: loop header
LB: loop body
LE: loop exit
PB: predicated region body
PF: predicated region fallthrough
CT: control target
= control target key end

     0   :  { %s1627_s0 = inlined_call_operand.vmem [shape: f32[2,16,8,128], index: 0, kind: input, shape index: {}, may-alias: {0,1}]   ;;  %s1628_s1 = inlined_call_operand.vmem [shape: f32[2,16,8,128], index: 1, kind: input, shape index: {}, may-alias: {0,1}]   ;;  %s1629_s2 = inlined_call_operand.vmem [shape: bf16[576,128], index: 2, kind: input, shape index: {}]   ;;  %s1630_s3 = inlined_call_operand.vmem [shape: f32[1,128], index: 3, kind: input, shape index: {}]   ;;  %s1631_s4 = inlined_call_operand.hbm [shape: f32[2,64,128], index: 4, kind: output, shape index: {}]  }
   0x1   :  { %1636 = sst [smem:[#allocation7_spill]] %s1627_s0 }
   0x2   :  { %9 = vsyncpa [#allocation3], 0 }
   0x3   :  { %11 = vsyncpa [#allocation3 + $0x1], 0  ;;  %s1326_s15 = smov 0   ;;  %s1328_s16 = smov 0  }
   0x4   :  { %s1330_s17 = smov 0   ;;  %s1332_s18 = smov 0  }
   0x5   :  { %s1334_s19 = smov 0   ;;  %s1336_s20 = smov 0  }
   0x6   :  { %s1338_s21 = smov 0   ;;  %s1340_s22 = smov 0  }
   0x7 LB: > { %s951_s23 = sadd.s32 4294967295, %s1293_s22   ;;  %s952_s24 = sadd.s32 4294967294, %s1293_s22   ;;  %s1293_s22 = sphi %s1340_s22, %s17_s22   ;;  %s1289_s21 = sphi %s1338_s21, %s1653_s21   ;;  %s1285_s20 = sphi %s1336_s20, %s1652_s20   ;;  %s1281_s19 = sphi %s1334_s19, %s1651_s19   ;;  %s1277_s18 = sphi %s1332_s18, %s1650_s18   ;;  %s1273_s17 = sphi %s1330_s17, %s1649_s17   ;;  %s1269_s16 = sphi %s1328_s16, %s1648_s16   ;;  %s1265_s15 = sphi %s1326_s15, %s1647_s15  }
   0x8   : > { %s26_s25 = sadd.s32 1, %s1285_s20  ;;  %s29_s26 = sadd.s32 1, %s1289_s21 }
   0x9   : > { %p27_p0 = scmp.ge.s32.totalorder %s26_s25, 4  ;;  %p154_p1 = scmp.ne.s32.totalorder %s1273_s17, %s1269_s16 }
   0xa   : > { %p155_p2 = scmp.eq.s32.totalorder %s951_s23, 7  ;;  %p160_p5 = scmp.ne.s32.totalorder %s1269_s16, %s1265_s15 }
   0xb   : > { %s1655_s25 = smov (%p27_p0, %s26_s25), 0  ;;  %s1657_s26 = smov (!%p27_p0, %s29_s26), %s1289_s21 }
   0xc   : > { %1637 = sst [smem:[#allocation5_spill]] %s1655_s25  ;;  %s140_s27 = ssub.s32 %s1285_s20, %s1655_s25 }
   0xd   : > { %p1377_p3 = por %p155_p2, %p154_p1  ;;  %p31_p4 = scmp.ge.s32.totalorder %s1657_s26, 2 }
   0xe   : > { %p161_p6 = scmp.eq.s32.totalorder %s952_s24, 7  ;;  %p959_p7 = scmp.ge.s32.totalorder %s1293_s22, 1 }
   0xf   : > { %s1659_s26 = smov (%p31_p4, %s1657_s26), 0  ;;  %p217_p9 = scmp.lt.s32.totalorder %s1293_s22, 9 }
  0x10   : > { %1639 = sst [smem:[#allocation6_spill]] %s1659_s26  ;;  %p1386_p8 = por %p161_p6, %p160_p5 }
  0x11   : > { %s139_s30 = ssub.s32 %s1289_s21, %s1659_s26  ;;  %s144_s5 = sadd.s32 1, %s1273_s17 }
  0x12   : > { %s141_s6 = sor.u32 %s140_s27, %s139_s30  ;;  %p218_p10 = pnand %p959_p7, %p217_p9 }
  0x13   : > { %p142_p11 = scmp.eq.s32.totalorder %s141_s6, 0  ;;  %s961_s8 = sshll.u32 (!%p218_p10), %s1277_s18, 2  ;;  %v1163_v7 = vld [vmem:[%s1629_s2 + $0x40] sm:$0xff] (!%p218_p10)   ;;  %v1165_v11 = vld [vmem:[%s1629_s2 + $0x48] sm:$0xff] (!%p218_p10)   ;;  %v1167_v22 = vld [vmem:[%s1629_s2 + $0x50] sm:$0xff] (!%p218_p10)   ;;  %v1296_v55 = vmov (!%p218_p10), 0.0  }
  0x14   : > { %221 = sbr.rel (%p218_p10) target bundleno = 517 (0x205), region = 36  ;;  %p260_p12 = scmp.lt.s32.totalorder (!%p218_p10), %s1281_s19, 1  ;;  %v1164_v8 = vld [vmem:[%s1629_s2] sm:$0xff] (!%p218_p10)   ;;  %1026 = vmatprep.subr.bf16.mxu0 (!%p218_p10), %v1163_v7  ;;  %v1166_v18 = vld [vmem:[%s1629_s2 + $0x8] sm:$0xff] (!%p218_p10)   ;;  %v1168_v27 = vld [vmem:[%s1629_s2 + $0x10] sm:$0xff] (!%p218_p10)   ;;  %vm335_vm0 = vcmask (!%p218_p10), 1040384  }
  0x15   : > { %s1395_s7 = scalar_select %p142_p11, %s1273_s17, %s144_s5  }
  0x16   : > { %p262_p13 = scmp.lt.s32.totalorder (!%p218_p10), %s961_s8, 15  ;;  %s965_s12 = sadd.s32 (!%p218_p10), 4294967295, %s961_s8  ;;  %1027 = vmatpush3.bf16.msra.mxu0 (!%p218_p10), %v1164_v8  ;;  %v1169_v29 = vld [vmem:[%s1629_s2 + $0x58] sm:$0xff] (!%p218_p10)   ;;  %v1173_v31 = vld [vmem:[%s1629_s2 + $0xc0] sm:$0xff] (!%p218_p10)   ;;  %v1177_v36 = vld [vmem:[%s1629_s2 + $0xc8] sm:$0xff] (!%p218_p10)   ;;  %vm1297_vm2 = vmmov (!%p218_p10), 0  }
  0x17   : > { %p271_p0 = scmp.gt.s32.totalorder (!%p218_p10), %s965_s12, 0  ;;  %p966_p1 = scmp.lt.s32.totalorder (!%p218_p10), %s965_s12, 15  ;;  %1028 = vmatprep.subr.bf16.mxu0 (!%p218_p10), %v1165_v11  ;;  %v1174_v33 = vld [vmem:[%s1629_s2 + $0x80] sm:$0xff] (!%p218_p10)   ;;  %v1170_v34 = vld [vmem:[%s1629_s2 + $0x18] sm:$0xff] (!%p218_p10)   ;;  %1048 = vmatprep.subr.bf16.mxu1 (!%p218_p10), %v1173_v31  ;;  %v1178_v37 = vld [vmem:[%s1629_s2 + $0x88] sm:$0xff] (!%p218_p10)   ;;  %vm379_vm4 = vcmask (!%p218_p10), 523264  }
  0x18   : > { %s1641_s0 = sld [smem:[#allocation7_spill]] (!%p218_p10)  ;;  %v1171_v35 = vld [vmem:[%s1629_s2 + $0x60] sm:$0xff] (!%p218_p10)   ;;  %1049 = vmatpush3.bf16.msra.mxu1 (!%p218_p10), %v1174_v33  ;;  %v1175_v39 = vld [vmem:[%s1629_s2 + $0x68] sm:$0xff] (!%p218_p10)   ;;  %v1181_v40 = vld [vmem:[%s1629_s2 + $0xd0] sm:$0xff] (!%p218_p10)   ;;  %p297_p2 = scmp.gt.s32.totalorder (!%p218_p10), %s1277_s18, 0 }
  0x19   : > { %v1172_v38 = vld [vmem:[%s1629_s2 + $0x20] sm:$0xff] (!%p218_p10)   ;;  %1050 = vmatprep.subr.bf16.mxu1 (!%p218_p10), %v1177_v36  ;;  %v1182_v41 = vld [vmem:[%s1629_s2 + $0x90] sm:$0xff] (!%p218_p10)   ;;  %v1176_v42 = vld [vmem:[%s1629_s2 + $0x28] sm:$0xff] (!%p218_p10)   ;;  %vm336_vm1 = vsmask.f32 (!%p218_p10), 256 }
  0x1a   : > { %1029 = vmatpush3.bf16.msra.mxu0 (!%p218_p10), %v1166_v18  ;;  %v1179_v43 = vld [vmem:[%s1629_s2 + $0x70] sm:$0xff] (!%p218_p10)   ;;  %v1185_v44 = vld [vmem:[%s1629_s2 + $0xd8] sm:$0xff] (!%p218_p10)   ;;  %v1187_v47 = vld [vmem:[%s1629_s2 + $0xe0] sm:$0xff] (!%p218_p10)  }
  0x1b   : > { %s1400_s9 = scalar_select %p260_p12, %s1281_s19, 1  ;;  %1030 = vmatprep.subr.bf16.mxu0 %v1167_v22  ;;  %v1180_v45 = vld [vmem:[%s1629_s2 + $0x30] sm:$0xff]   ;;  %v1186_v46 = vld [vmem:[%s1629_s2 + $0x98] sm:$0xff]   ;;  %v1189_v49 = vld [vmem:[%s1629_s2 + $0xa0] sm:$0xff]  }
  0x1c   : > { %s263_s10 = scalar_select %p262_p13, %s961_s8, 15  ;;  %1051 = vmatpush3.bf16.msra.mxu1 %v1178_v37  ;;  %v1183_v48 = vld [vmem:[%s1629_s2 + $0x78] sm:$0xff]   ;;  %v1190_v50 = vld [vmem:[%s1629_s2 + $0xe8] sm:$0xff]   ;;  %v1188_v54 = vld [vmem:[%s1629_s2 + $0x100] sm:$0xff]  }
  0x1d   : > { %s962_s11 = sshll.u32 %s1400_s9, 4  ;;  %s1632_s8 = smov 64   ;;  %1052 = vmatprep.subr.bf16.mxu1 %v1181_v40  ;;  %v1184_v51 = vld [vmem:[%s1629_s2 + $0x38] sm:$0xff]   ;;  %v1192_v52 = vld [vmem:[%s1629_s2 + $0xa8] sm:$0xff]   ;;  %v1193_v60 = vld [vmem:[%s1629_s2 + $0xf0] sm:$0xff]  }
  0x1e   : > { %s265_s13 = sadd.s32 %s962_s11, %s263_s10  ;;  %1031 = vmatpush3.bf16.msra.mxu0 %v1168_v27  ;;  %v1191_v56 = vld [vmem:[%s1629_s2 + $0x108] sm:$0xff]   ;;  %v1194_v61 = vld [vmem:[%s1629_s2 + $0x110] sm:$0xff]   ;;  %vm1544_vm3 = vmand %vm335_vm0, %vm336_vm1 }
  0x1f   : > { %s963_s14 = sshll.u32 %s265_s13, 3  ;;  %1032 = vmatprep.subr.bf16.mxu0 %v1169_v29  ;;  %v1195_v62 = vld [vmem:[%s1629_s2 + $0xb0] sm:$0xff]  }
  0x20   : > { %s267_s27 = scalar_lea.vmem %s1641_s0, %s963_s14  ;;  %1053 = vmatpush3.bf16.msra.mxu1 %v1182_v41 }
  0x21   : > { %v288_v0 = vld [vmem:[%s267_s27 + $0x8] sm:$0xff]  ;;  %v290_v1 = vld [vmem:[%s267_s27 + $0x18] sm:$0xff]  ;;  %v1408_v2 = vld [vmem:[%s267_s27] sm:$0xff]  ;;  %s272_s30 = scalar_select %p271_p0, %s965_s12, 0  ;;  %1054 = vmatprep.subr.bf16.mxu1 %v1185_v44 }
  0x22   : > { %v1410_v3 = vpack.c.bf16 %v288_v0, %v288_v0  ;;  %v294_v4 = vpack.c.bf16 %v290_v1, %v290_v1  ;;  %v291_v5 = vpack.c.bf16 %v1408_v2, %v1408_v2  ;;  %v1414_v6 = vld [vmem:[%s267_s27 + $0x10] sm:$0xff]  ;;  %v1025_v9 = vpack.c.bf16 %v290_v1, %v288_v0  ;;  %1033 = vmatpush3.bf16.msra.mxu0 %v1170_v34  ;;  %s298_s14 = scalar_select %p297_p2, 1, 0  ;;  %v1196_v0 = vld [vmem:[%s1629_s2 + $0xf8] sm:$0xff]  }
  0x23   : > { %v293_v10 = vpack.c.bf16 %v1414_v6, %v1414_v6  ;;  %s1661_s30 = smov (!%p966_p1, %s272_s30), 15  ;;  %1034 = vmatprep.subr.bf16.mxu0 %v1171_v35  ;;  %v1024_v53 = vpack.c.bf16 %v1414_v6, %v1408_v2  ;;  %v1197_v1 = vld [vmem:[%s1629_s2 + $0x118] sm:$0xff]  }
  0x24   : > { %v341_v12 = vshrl.u32 %v1410_v3, 16  ;;  %v344_v13 = vshll.u32 %v1410_v3, 16  ;;  %v348_v14 = vshrl.u32 %v294_v4, 16  ;;  %742 = vmatprep.mubr.bf16.mxu0 %v1025_v9  ;;  %v316_v15 = vshrl.u32 %v291_v5, 16  ;;  %s1432_s23 = sadd.s32 %s1661_s30, %s962_s11  ;;  %1055 = vmatpush3.bf16.msra.mxu1 %v1186_v46  ;;  %s299_s12 = scvt.s32.f32 %s298_s14  ;;  %v1198_v2 = vld [vmem:[%s1629_s2 + $0xb8] sm:$0xff]  }
  0x25   : > { %v319_v16 = vshll.u32 %v291_v5, 16  ;;  %v323_v17 = vshrl.u32 %v293_v10, 16  ;;  %v351_v21 = vshll.u32 %v294_v4, 16  ;;  %v326_v25 = vshll.u32 %v293_v10, 16  ;;  %1056 = vmatprep.subr.bf16.mxu1 %v1187_v47  ;;  %s972_s30 = sshll.u32 %s1432_s23, 3  ;;  %s1017_s14 = sshll.u32 %s1277_s18, 1 }
  0x26   : > { %v343_v19 = vrot.slane %v341_v12, 7  ;;  %v350_v20 = vrot.slane %v348_v14, 7  ;;  %v318_v23 = vrot.slane %v316_v15, 7  ;;  %1035 = vmatpush3.bf16.msra.mxu0 %v1172_v38  ;;  %s302_s24 = sshrl.u32 %s299_s12, 16  ;;  %p301_p4 = scmp.ne.f32.partialorder %s299_s12, %s299_s12 }
  0x27   : > { %v325_v24 = vrot.slane %v323_v17, 7  ;;  %1036 = vmatprep.subr.bf16.mxu0 %v1175_v39  ;;  %s303_s27 = sand.u32 1, %s302_s24  ;;  %s280_s10 = scalar_lea.vmem %s1628_s1, %s972_s30 }
  0x28   : > { %v346_v26 = vor.u32 %v344_v13, %v343_v19  ;;  %v321_v28 = vor.u32 %v319_v16, %v318_v23  ;;  %v353_v30 = vor.u32 %v351_v21, %v350_v20  ;;  %1057 = vmatpush3.bf16.msra.mxu1 %v1189_v49  ;;  %s304_s5 = sadd.s32 32767, %s303_s27  ;;  %v295_v57 = vld [vmem:[%s280_s10] sm:$0xff]  ;;  %s256_s30 = sand.u32 1, %s1269_s16  }
  0x29   : > { %v328_v32 = vor.u32 %v326_v25, %v325_v24  ;;  %1058 = vmatprep.subr.bf16.mxu1 %v1190_v50  ;;  %s305_s9 = sadd.s32 %s304_s5, %s299_s12  ;;  %v296_v58 = vpack.c.bf16 %v295_v57, %v295_v57  ;;  %s1018_s24 = sshll.u32 %s1281_s19, 3 }
  0x2a   : > { %354 = vrot.lane.b32.xlu0 %v346_v26, %s1632_s8  ;;  %329 = vrot.lane.b32.xlu1 %v321_v28, %s1632_s8  ;;  %s306_s11 = sand.u32 4294901760, %s305_s9  ;;  %s848_s27 = sadd.s32 %s1018_s24, %s1017_s14 }
  0x2b   : > { %1037 = vmatpush3.bf16.msra.mxu0 %v1176_v42  ;;  %s1663_s11 = smov (%p301_p4, %s306_s11), 2143289344  ;;  %s1019_s0 = sshll.u32 %s848_s27, 7 }
  0x2c   : > { %1038 = vmatprep.subr.bf16.mxu0 %v1179_v43  ;;  %1059 = vmatpush3.bf16.msra.mxu1 %v1192_v52  ;;  %s309_s6 = sshrl.u32 %s1663_s11, 16  ;;  %s1644_s11 = smov 64  }
  0x2d   : > { %s310_s13 = sshll.u32 %s309_s6, 16  ;;  %1060 = vmatprep.subr.bf16.mxu1 %v1193_v60  ;;  %s1298_s5 = smov [#allocation2]  }
  0x2e   : > { %356 = vrot.lane.b32.xlu0 %v353_v30, %s1632_s8  ;;  %331 = vrot.lane.b32.xlu1 %v328_v32, %s1632_s8  ;;  %s311_s26 = sor.u32 %s310_s13, %s309_s6  ;;  %s960_s6 = sshll.u32 %s256_s30, 4  ;;  %v973_v32 = vld [vmem:[%s1630_s3] ss:$0 sm:$0xff] }
  0x2f   : > { %1039 = vmatpush3.bf16.msra.mxu0 %v1180_v45  ;;  %v312_v59 = vstv %s311_s26  ;;  %s258_s12 = scalar_lea.vmem [#allocation2], %s960_s6  ;;  %s1573_s8 = scalar_lea.hbm %s1631_s4, %s1019_s0 }
  0x30   : > { %1040 = vmatprep.subr.bf16.mxu0 %v1183_v48  ;;  %v314_v63 = vmul.bf16 %v312_v59, %v296_v58  ;;  %1061 = vmatpush3.bf16.msra.mxu1 %v1195_v62  ;;  %s851_s23 = sshll.u32 %s258_s12, 4  ;;  %s1575_s26 = scalar_lea.sflag [#allocation3], %s256_s30  ;;  %s1568_s23 = int_to_ptr.vmem [resolvable:$true] %s851_s23 }
  0x31   : > { %1062 = vmatprep.subr.bf16.mxu1 %v1196_v0  ;;  %s1199_s25 = scalar_lea.vmem %s1568_s23, 256  ;;  %s1203_s9 = sshll.u32 %s1298_s5, 4  ;;  %s1204_s9 = int_to_ptr.vmem [resolvable:$false] %s1203_s9 }
  0x32   : > { %v363_v4 = vshrl.u32 %v314_v63, 16  ;;  %v366_v7 = vshll.u32 %v314_v63, 16  ;;  %v976_v23 = vcombine.low %v314_v63, %v1410_v3  ;;  %p1200_p5 = scmp.ne.s32.totalorder %s1568_s23, %s1199_s25  ;;  %p1206_p9 = scmp.lt.s32.totalorder %s1568_s23, %s1204_s9 }
  0x33   : > { %1041 = vmatpush3.bf16.msra.mxu0 %v1184_v51 }
  0x34   : > { %1075 = vmatprep.subr.bf16.mxu0 %v1296_v55  ;;  %1063 = vmatpush3.bf16.msra.mxu1 %v1198_v2  ;;  %v365_v6 = vrot.slane %v363_v4, 7  ;;  %p1201_p6 = pnand %p1200_p5, %p1377_p3 }
  0x36   : > { %743 = vmatmul.mubr.bf16.vlgmr.msra.gmra.mrb[0].mxu0 %v1024_v53  ;;  %v368_v10 = vor.u32 %v366_v7, %v365_v6  ;;  %p1202_p7 = pneg %p1201_p6 }
  0x37   : > { %1076 = vmatpush3.bf16.msra.mxu0 %v1188_v54  ;;  %1083 = vmatprep.mubr.msk.bf16.mxu0 %vm1297_vm2, %v1296_v55 }
  0x38   : > { %1077 = vmatprep.subr.bf16.mxu0 %v1296_v55 }
  0x3b   : > { %1078 = vmatpush3.bf16.msra.mxu0 %v1191_v56 }
  0x3c   : > { %1079 = vmatprep.subr.bf16.mxu0 %v1296_v55 }
  0x3f   : > { %1080 = vmatpush3.bf16.msra.mxu0 %v1194_v61 }
  0x40   : > { %1081 = vmatprep.subr.bf16.mxu0 %v1296_v55 }
  0x43   : > { %1082 = vmatpush3.bf16.msra.mxu0 %v1197_v1 }
  0x9c   : > { %v355_v8 = vpop.permute.xlu0 %354  ;;  %v330_v13 = vpop.permute.xlu1 %329 }
  0x9d   : > { %v360_v9 = vsel %vm1544_vm3, 0, %v355_v8  ;;  %v338_v16 = vsel %vm1544_vm3, 0, %v330_v13 }
  0x9e   : > { %375 = vrot.lane.b32.xlu0 %v360_v9, %s1644_s11 }
  0xa0   : > { %v357_v11 = vpop.permute.xlu0 %356  ;;  %v332_v14 = vpop.permute.xlu1 %331 }
  0xa1   : > { %v361_v12 = vsel %vm1544_vm3, 0, %v357_v11  ;;  %v339_v17 = vsel %vm1544_vm3, 0, %v332_v14 }
  0xa2   : > { %369 = vrot.lane.b32.xlu0 %v368_v10, %s1644_s11  ;;  %377 = vrot.lane.b32.xlu1 %v361_v12, %s1644_s11  ;;  %s1205_s11 = scalar_lea.vmem %s1204_s9, 512 }
  0xa3   : > { %p1207_p10 = scmp.lt.s32.totalorder %s1205_s11, %s1199_s25 }
  0xa5   : > { %p1208_p11 = por %p1207_p10, %p1206_p9 }
  0xa7   : > { %p1209_p12 = pnand %p1208_p11, %p1202_p7 }
 0x109   : > { %v1042_v26 = vpop.f32.mrb[0].mxu0 }
 0x10a   : > { %v1043_v27 = vpop.f32.mrb[1].mxu0 }
 0x10b   : > { %v1044_v28 = vadd.f32 %v1043_v27, %v1042_v26  ;;  %v1045_v29 = vpop.f32.mrb[2].mxu0 }
 0x10c   : > { %v1046_v30 = vpop.f32.mrb[3].mxu0 }
 0x10d   : > { %v1047_v31 = vadd.f32 %v1046_v30, %v1045_v29  ;;  %v745_v37 = vadd.f32 %v1044_v28, %v973_v32 }
 0x10f   : > { %v748_v42 = vadd.f32 %v1047_v31, %v973_v32 }
 0x110   : > { %v376_v15 = vpop.permute.xlu0 %375 }
 0x111   : > { %v382_v21 = vsel %vm379_vm4, %v338_v16, %v376_v15 }
 0x114   : > { %v370_v18 = vpop.permute.xlu0 %369  ;;  %v378_v19 = vpop.permute.xlu1 %377 }
 0x115   : > { %v372_v20 = vsel %vm1544_vm3, 0, %v370_v18  ;;  %v385_v22 = vsel %vm379_vm4, %v339_v17, %v378_v19 }
 0x116   : > { %v978_v24 = vcombine.low %v372_v20, %v360_v9  ;;  %v977_v25 = vcombine.low %v382_v21, %v385_v22 }
 0x118   : > { %783 = vmatprep.mubr.bf16.mxu1 %v977_v25  ;;  %1084 = vmatmul.mubr.msk.bf16.vlgmr.msra.gmra.mrb[4].mxu0 %vm379_vm4, %v978_v24 }
 0x119   : > { %784 = vmatmul.mubr.bf16.vlgmr.msra.gmra.mrb[0].mxu1 %v976_v23 }
 0x1eb   : > { %v826_v3 = vpop.f32.mrb[4].mxu0 }
 0x1ec   : > { %v1064_v33 = vpop.f32.mrb[0].mxu1  ;;  %v1085_v34 = vpop.f32.mrb[5].mxu0 }
 0x1ed   : > { %v1065_v35 = vpop.f32.mrb[1].mxu1  ;;  %v829_v36 = vpop.f32.mrb[6].mxu0 }
 0x1ee   : > { %v1066_v38 = vadd.f32 %v1065_v35, %v1064_v33  ;;  %v1067_v39 = vpop.f32.mrb[2].mxu1  ;;  %v1086_v40 = vpop.f32.mrb[7].mxu0 }
 0x1ef   : > { %v1068_v41 = vpop.f32.mrb[3].mxu1 }
 0x1f0   : > { %v786_v43 = vadd.f32 %v1066_v38, %v745_v37  ;;  %v1069_v44 = vadd.f32 %v1068_v41, %v1067_v39 }
 0x1f2   : > { %v827_v45 = vadd.f32 %v826_v3, %v786_v43  ;;  %v789_v46 = vadd.f32 %v1069_v44, %v748_v42 }
 0x1f4   : > { %833 = vst [vmem:[%s258_s12] sm:$0xff] %v827_v45  ;;  %v830_v47 = vadd.f32 %v829_v36, %v789_v46 }
 0x1f6   : > { %834 = vst [vmem:[%s258_s12 + $0x8] sm:$0xff] %v830_v47 }
 0x1f7   : > { %1212 = shalt.err (!%p1209_p12)
}
 0x1f8   : > { %s1213_s30 = scalar_lea.hbm %s1573_s8, 256  ;;  %s1217_s13 = scalar_lea.hbm %s1631_s4, 2048 }
 0x1f9   : > { %p1214_p13 = scmp.ne.s32.totalorder %s1573_s8, %s1213_s30  ;;  %p1218_p2 = scmp.lt.u32.totalorder %s1573_s8, %s1631_s4 }
 0x1fa   : > { %p1219_p4 = scmp.lt.u32.totalorder %s1217_s13, %s1213_s30  ;;  %p1221_p6 = scmp.lt.u32.totalorder %s1213_s30, %s1573_s8 }
 0x1fb   : > { %p1215_p0 = pnand %p1214_p13, %p1377_p3 }
 0x1fc   : > { %p1220_p5 = por %p1219_p4, %p1218_p2 }
 0x1fd   : > { %p1216_p1 = pneg %p1215_p0 }
 0x1fe   : > { %p1222_p7 = por %p1221_p6, %p1220_p5 }
 0x200   : > { %p1223_p9 = pnand %p1222_p7, %p1216_p1 }
 0x202   : > { %1226 = shalt.err (!%p1223_p9)
}
 0x203   : > { %s1299_s27 = smov 128   ;;  %s1300_s12 = smov 8  }
 0x204   : > { %1087 = dma.vmem_to_hbm [thread:$0]  (%p1377_p3), %s1568_s23, 256, %s1573_s8, %s1575_s26, %s1299_s27, %s1299_s27, %s1300_s12  }
 0x205 PF: > { %p1093_p10 = scmp.ge.s32.totalorder %s1293_s22, 2  ;;  %s866_s0 = sand.u32 1, %s1265_s15  }
 0x206   : > { %s867_s18 = scalar_lea.sflag [#allocation3], %s866_s0 }
 0x207   : > { %p1090_p11 = pnand %p1093_p10, %p1386_p8 }
 0x209   : > { %1260 = dma.done.wait (!%p1090_p11), %s867_s18, 256  }
 0x20a   : > { %1262 = vsyncadd (!%p1090_p11), %s867_s18, 4294967040  ;;  %s17_s22 = sadd.s32 1, %s1293_s22   ;;  %s1645_s28 = sld [smem:[#allocation5_spill]] }
 0x20b   : > { %p14_p12 = scmp.ge.s32.totalorder %s17_s22, 10   ;;  %s1646_s23 = sld [smem:[#allocation6_spill]] }
 0x20c   : > { %s1647_s15 = smov %s1269_s16  ;;  %s1648_s16 = smov %s1273_s17 }
 0x20d   : > { %s1649_s17 = smov %s1395_s7  ;;  %s1650_s18 = smov %s1285_s20 }
 0x20e   : > { %s1651_s19 = smov %s1289_s21  ;;  %16 = sbr.rel (!%p14_p12) target bundleno = 7 (0x7), region = 74 }
 0x210   : > { %s1652_s20 = smov %s1645_s28 }
 0x211   : > { %s1653_s21 = smov %s1646_s23 }
 0x215   :  { %872 = vsyncpa [#allocation3], 1 }
 0x216   :  { %874 = vsyncpa [#allocation3 + $0x1], 1 }

</bundles_post_ra>
